<compile_context>
chip_gen: v6e
topology: v6e:2x2x1
jax: 0.10.0
libtpu: 0.0.40
codegen_flags: <defaults>
</compile_context>

<pallas_src>
import jax
import jax.numpy as jnp
from jax.experimental import pallas as pl
from jax.experimental.pallas import tpu as pltpu

_LANE = 128
_CHUNK = 512  # feature-axis chunk (lanes) processed per inner step inside the kernel


def _round_up(x, m):
    return ((x + m - 1) // m) * m


def _make_fm_kernel(feats, chunk):
    """refs = (*embedding_tiles, out_tile). Each embedding tile is (bm, F_i)."""
    n_inputs = len(feats)

    def kernel(*refs):
        in_refs = refs[:n_inputs]
        o_ref = refs[n_inputs]                       # (1, 1, bm) lane-dense block
        bm = in_refs[0].shape[0]
        s = jnp.zeros((bm, 1), jnp.float32)
        ss = jnp.zeros((bm, 1), jnp.float32)
        for r, f in zip(in_refs, feats):
            c0 = 0
            while c0 < f:                            # static trip count (unrolled at trace)
                c = min(chunk, f - c0)
                # Bounded (bm, chunk) f32 temporaries regardless of F_i.
                x = r[:, c0:c0 + c].astype(jnp.float32)
                s = s + jnp.sum(x, axis=1, keepdims=True)
                ss = ss + jnp.sum(x * x, axis=1, keepdims=True)
                c0 += c
        cross = 0.5 * (s * s - ss)                   # (bm, 1) f32
        # Lane-dense store: batch rows of this tile go along the lane dimension.
        o_ref[...] = cross.reshape(1, 1, -1).astype(o_ref.dtype)

    return kernel


def _default_vmem_budget():
    """~half of physical VMEM: ~64 MiB scoped on v5e/v6e (128 MiB), ~32 MiB on v7x (64 MiB)."""
    cap = None
    try:
        cap = getattr(pltpu.get_tpu_info(), "vmem_capacity_bytes", None)
    except Exception:
        cap = None
    if not cap:
        cap = 64 * 1024 * 1024  # conservative fallback: v7x physical VMEM per TensorCore
    return int(min(max(cap // 2, 16 * 1024 * 1024), 64 * 1024 * 1024))


def _pick_bm(batch, feats, itemsizes, chunk, sub, vmem_budget_bytes):
    """Largest batch tile whose full working set fits the scoped-VMEM budget."""
    usable = int(vmem_budget_bytes * 0.8)  # headroom for Mosaic internal scratch
    # Double-buffered input tiles, lane-padded to 128, per-input itemsize.
    in_bytes = 2 * sum(_round_up(f, _LANE) * it for f, it in zip(feats, itemsizes))
    # Chunk-sized in-kernel f32 temporaries (astype copy + x*x) and f32 accumulators.
    tmp_bytes = 2 * _round_up(min(chunk, max(feats)), _LANE) * 4 + 4 * 4
    # Double-buffered f32 output (1 lane element per row).
    out_bytes = 2 * 4
    per_row = in_bytes + tmp_bytes + out_bytes
    bm = max(usable // max(per_row, 1), sub)

    # Megacore: at least 2 grid steps whenever the batch allows it (v7x has 2 TCs).
    if batch >= 2 * sub:
        bm = min(bm, _round_up(pl.cdiv(batch, 2), sub))

    if bm >= batch:
        return int(batch)                  # single full-extent tile (always legal)

    # Alignment for the tiled case: multiple of 128 (unmasked lane-dense store)
    # when large, otherwise sublane multiple.
    if bm >= _LANE:
        bm = (bm // _LANE) * _LANE
    else:
        bm = max((bm // sub) * sub, sub)

    # Prefer an even number of grid steps (load-balances v7x's two TensorCores).
    n_tiles = pl.cdiv(batch, bm)
    if n_tiles > 1 and n_tiles % 2 == 1:
        cand = _round_up(pl.cdiv(batch, n_tiles + 1), sub)
        if sub <= cand < batch and pl.cdiv(batch, cand) % 2 == 0:
            bm = cand
    return int(bm)


def factorization_machine(embeddings, *, bm=None, vmem_budget_bytes=None):
    """embeddings: list of [B, N_i, D_i] arrays. Returns the FM cross term [B, 1] (float32)."""
    B = int(embeddings[0].shape[0])
    # Free row-major reshape to [B, N_i*D_i]; NO concat => no extra HBM round trip.
    flat = [e.reshape(B, -1) for e in embeddings]
    feats = [int(f.shape[1]) for f in flat]
    itemsizes = [jnp.dtype(f.dtype).itemsize for f in flat]
    f_total = sum(feats)
    chunk = min(_CHUNK, max(feats))

    if vmem_budget_bytes is None:
        vmem_budget_bytes = _default_vmem_budget()
    sub = 16 if any(it < 4 for it in itemsizes) else 8  # sub-32-bit dtypes pack along sublanes
    if bm is None:
        bm = _pick_bm(B, feats, itemsizes, chunk, sub, vmem_budget_bytes)
    n_tiles = pl.cdiv(B, bm)
    # TODO(synk): add a second "arbitrary" grid axis over the feature dim (with VMEM scratch
    # accumulators) for F so wide that even the minimal batch tile exceeds the VMEM budget.

    cost = pl.CostEstimate(
        flops=3 * B * f_total,
        transcendentals=0,
        bytes_accessed=B * sum(f * it for f, it in zip(feats, itemsizes)) + B * 4,
    )

    out = pl.pallas_call(
        _make_fm_kernel(tuple(feats), chunk),
        out_shape=jax.ShapeDtypeStruct((n_tiles, 1, bm), jnp.float32),
        grid_spec=pltpu.PrefetchScalarGridSpec(
            num_scalar_prefetch=0,
            grid=(n_tiles,),
            in_specs=[pl.BlockSpec((bm, f), lambda i: (i, 0)) for f in feats],
            out_specs=pl.BlockSpec((1, 1, bm), lambda i: (i, 0, 0)),
        ),
        compiler_params=pltpu.CompilerParams(
            dimension_semantics=("parallel",),
            vmem_limit_bytes=int(vmem_budget_bytes),
        ),
        cost_estimate=cost,
    )(*flat)

    # (n_tiles, 1, bm) lane-dense slab -> [B, 1]; drops boundary-padded lanes, if any.
    return out.reshape(-1)[:B][:, None]


def _reference(embeddings):
    B = embeddings[0].shape[0]
    fm_input = jnp.concatenate(
        [e.reshape(B, -1).astype(jnp.float32) for e in embeddings], axis=1)
    s = jnp.sum(fm_input, axis=1, keepdims=True)
    ss = jnp.sum(fm_input * fm_input, axis=1, keepdims=True)
    return 0.5 * (s * s - ss)


if __name__ == "__main__":
    key = jax.random.PRNGKey(0)
    k1, k2, k3, k4, k5, k6 = jax.random.split(key, 6)

    # Case 1: shapes from the torchrec docstring example (FM has no learnable params).
    B = 8
    embeddings = [
        jax.random.normal(k1, (B, 2, 64), dtype=jnp.float32),
        jax.random.normal(k2, (B, 2, 32), dtype=jnp.float32),
    ]
    out = jax.block_until_ready(factorization_machine(embeddings))
    ref = _reference(embeddings)
    assert out.shape == (B, 1), out.shape
    assert jnp.allclose(out, ref, rtol=1e-4, atol=1e-4)

    # Case 2: batch not divisible by the tile (exercises the partial last block path).
    B2 = 10
    embeddings2 = [
        jax.random.normal(k3, (B2, 3, 16), dtype=jnp.float32),
        jax.random.normal(k4, (B2, 1, 32), dtype=jnp.float32),
    ]
    out2 = jax.block_until_ready(factorization_machine(embeddings2, bm=8))
    ref2 = _reference(embeddings2)
    assert out2.shape == (B2, 1), out2.shape
    assert jnp.allclose(out2, ref2, rtol=1e-4, atol=1e-4)

    # Case 3: mixed-dtype (bf16 + f32) embeddings, auto-sized bm, feature chunking path.
    B3 = 24
    embeddings3 = [
        jax.random.normal(k5, (B3, 4, 160), dtype=jnp.bfloat16),
        jax.random.normal(k6, (B3, 2, 96), dtype=jnp.float32),
    ]
    out3 = jax.block_until_ready(factorization_machine(embeddings3))
    ref3 = _reference(embeddings3)
    assert out3.shape == (B3, 1), out3.shape
    assert jnp.allclose(out3, ref3, rtol=1e-3, atol=1e-2)

    print("KERNEL_OK")
</pallas_src>

<mosaic_0001>
module attributes {stable_mosaic.version = 11 : i64} {
  func.func @kernel(%arg0: i32, %arg1: memref<8x128xf32, #tpu.memory_space<vmem>>, %arg2: memref<8x64xf32, #tpu.memory_space<vmem>>, %arg3: memref<1x1x8xf32, #tpu.memory_space<vmem>>) attributes {dimension_semantics = [#tpu.dimension_semantics<parallel>], iteration_bounds = array<i64: 1>, scalar_prefetch = 0 : i64, scratch_operands = 0 : i64, tpu.core_type = #tpu.core_type<tc>, window_params = [{transform_indices = @transform_0, window_bounds = array<i64: 8, 128>}, {transform_indices = @transform_1, window_bounds = array<i64: 8, 64>}, {transform_indices = @transform_2, window_bounds = array<i64: 1, 1, 8>}]} {
    %cst = arith.constant 0.000000e+00 : f32
    %0 = vector.broadcast %cst : f32 to vector<8x1xf32>
    %cst_0 = arith.constant 0.000000e+00 : f32
    %1 = vector.broadcast %cst_0 : f32 to vector<8x1xf32>
    %c0 = arith.constant 0 : index
    %c0_1 = arith.constant 0 : index
    %2 = vector.load %arg1[%c0, %c0_1] : memref<8x128xf32, #tpu.memory_space<vmem>>, vector<8x128xf32>
    %cst_2 = arith.constant dense<0.000000e+00> : vector<8xf32>
    %3 = vector.multi_reduction <add>, %2, %cst_2 [1] : vector<8x128xf32> to vector<8xf32>
    %4 = vector.shape_cast %3 : vector<8xf32> to vector<8x1xf32>
    %5 = arith.addf %0, %4 : vector<8x1xf32>
    %6 = arith.mulf %2, %2 : vector<8x128xf32>
    %cst_3 = arith.constant dense<0.000000e+00> : vector<8xf32>
    %7 = vector.multi_reduction <add>, %6, %cst_3 [1] : vector<8x128xf32> to vector<8xf32>
    %8 = vector.shape_cast %7 : vector<8xf32> to vector<8x1xf32>
    %9 = arith.addf %1, %8 : vector<8x1xf32>
    %c0_4 = arith.constant 0 : index
    %c0_5 = arith.constant 0 : index
    %10 = vector.load %arg2[%c0_4, %c0_5] : memref<8x64xf32, #tpu.memory_space<vmem>>, vector<8x64xf32>
    %cst_6 = arith.constant dense<0.000000e+00> : vector<8xf32>
    %11 = vector.multi_reduction <add>, %10, %cst_6 [1] : vector<8x64xf32> to vector<8xf32>
    %12 = vector.shape_cast %11 : vector<8xf32> to vector<8x1xf32>
    %13 = arith.addf %5, %12 : vector<8x1xf32>
    %14 = arith.mulf %10, %10 : vector<8x64xf32>
    %cst_7 = arith.constant dense<0.000000e+00> : vector<8xf32>
    %15 = vector.multi_reduction <add>, %14, %cst_7 [1] : vector<8x64xf32> to vector<8xf32>
    %16 = vector.shape_cast %15 : vector<8xf32> to vector<8x1xf32>
    %17 = arith.addf %9, %16 : vector<8x1xf32>
    %18 = arith.mulf %13, %13 : vector<8x1xf32>
    %19 = arith.subf %18, %17 : vector<8x1xf32>
    %cst_8 = arith.constant 5.000000e-01 : f32
    %20 = vector.broadcast %cst_8 : f32 to vector<8x1xf32>
    %21 = arith.mulf %20, %19 : vector<8x1xf32>
    %22 = vector.shape_cast %21 : vector<8x1xf32> to vector<1x1x8xf32>
    %c0_9 = arith.constant 0 : index
    %c0_10 = arith.constant 0 : index
    %c0_11 = arith.constant 0 : index
    %23 = vector.load %arg3[%c0_9, %c0_10, %c0_11] : memref<1x1x8xf32, #tpu.memory_space<vmem>>, vector<1x1x8xf32>
    tpu.vector_store %arg3[%c0_9, %c0_10, %c0_11], %22 {strides = array<i32>} : memref<1x1x8xf32, #tpu.memory_space<vmem>>, vector<1x1x8xf32>,
    return
  }
  func.func @transform_0(%arg0: i32) -> (i32, i32) {
    %c0_i32 = arith.constant 0 : i32
    %c0_i32_0 = arith.constant 0 : i32
    return %arg0, %c0_i32 : i32, i32
  }
  func.func @transform_1(%arg0: i32) -> (i32, i32) {
    %c0_i32 = arith.constant 0 : i32
    %c0_i32_0 = arith.constant 0 : i32
    return %arg0, %c0_i32 : i32, i32
  }
  func.func @transform_2(%arg0: i32) -> (i32, i32, i32) {
    %c0_i32 = arith.constant 0 : i32
    %c0_i32_0 = arith.constant 0 : i32
    %c0_i32_1 = arith.constant 0 : i32
    return %arg0, %c0_i32, %c0_i32_0 : i32, i32, i32
  }
}

</mosaic_0001>

<bundles_post_ra>
// kernel: tpu_custom_call.1
= control target key start
LH: loop header
LB: loop body
LE: loop exit
PB: predicated region body
PF: predicated region fallthrough
CT: control target
= control target key end

     0   :  { %7 = vsyncpa [#allocation3], 0  ;;  %s180_s0 = inlined_call_operand.hbm [shape: f32[8,128], index: 0, kind: input, shape index: {}]   ;;  %s181_s1 = inlined_call_operand.hbm [shape: f32[8,64], index: 1, kind: input, shape index: {}]   ;;  %s182_s2 = inlined_call_operand.hbm [shape: f32[1,1,8], index: 2, kind: output, shape index: {}]  }
   0x1   :  { %8 = vsyncpa [#allocation6], 0 }
   0x2   :  { %9 = vsyncpa [#allocation4], 0  ;;  %s153_s9 = smov [#allocation2]   ;;  %s154_s11 = smov [#allocation5]  }
   0x3   :  { %s16_s10 = sshll.u32 %s153_s9, 4  ;;  %s26_s12 = sshll.u32 %s154_s11, 4  ;;  %s17_s10 = int_to_ptr.vmem [resolvable:$true] %s16_s10  ;;  %s27_s12 = int_to_ptr.vmem [resolvable:$true] %s26_s12 }
   0x4   :  { %s95_s13 = scalar_lea.vmem %s17_s10, 128  ;;  %p100_p1 = scmp.lt.s32.totalorder %s17_s10, %s17_s10 }
   0x5   :  { %p96_p0 = scmp.ne.s32.totalorder %s17_s10, %s95_s13  ;;  %p101_p2 = scmp.lt.s32.totalorder %s95_s13, %s95_s13 }
   0x7   :  { %p102_p3 = por %p101_p2, %p100_p1 }
   0x9   :  { %p103_p4 = pnand %p102_p3, %p96_p0 }
   0xb   :  { %106 = shalt.err (!%p103_p4)
}
   0xc   :  { %19 = dma.hbm_to_vmem [thread:$0]  %s180_s0, 128, %s17_s10, [#allocation3]  }
   0xd   :  { %s115_s16 = scalar_lea.vmem %s27_s12, 128  ;;  %p120_p6 = scmp.lt.s32.totalorder %s27_s12, %s27_s12 }
   0xe   :  { %p116_p5 = scmp.ne.s32.totalorder %s27_s12, %s115_s16  ;;  %p121_p7 = scmp.lt.s32.totalorder %s115_s16, %s115_s16 }
  0x10   :  { %p122_p8 = por %p121_p7, %p120_p6 }
  0x12   :  { %p123_p9 = pnand %p122_p8, %p116_p5 }
  0x14   :  { %126 = shalt.err (!%p123_p9)
}
  0x15   :  { %29 = dma.hbm_to_vmem [thread:$0]  %s181_s1, 128, %s27_s12, [#allocation6]  }
  0x16   :  { %147 = dma.done.wait [#allocation3], 128  }
  0x17   :  { %148 = vsyncadd [#allocation3], 4294967168 }
  0x18   :  { %149 = dma.done.wait [#allocation6], 128  }
  0x19   :  { %150 = vsyncadd [#allocation6], 4294967168  ;;  %vm45_vm0 = vcmask 523264   ;;  %v36_v0 = vld [vmem:[#allocation2] sm:$0xff]  ;;  %v44_v1 = vld [vmem:[#allocation5] sm:$0xff]  ;;  %v59_v7 = vlaneseq  ;;  %s155_s0 = smov [#allocation7]  }
  0x1a   :  { %37 = vadd.xlane.f32.xlu0 %v36_v0  ;;  %v40_v2 = vmul.f32 %v36_v0, %v36_v0  ;;  %v50_v3 = vmul.f32 %v44_v1, %v44_v1  ;;  %v46_v4 = vsel %vm45_vm0, %v44_v1, 0.0  ;;  %s74_s1 = sshll.u32 %s155_s0, 4  ;;  %vm66_vm1 = vcmask 57344   ;;  %s75_s1 = int_to_ptr.vmem [resolvable:$true] %s74_s1 }
  0x1b   :  { %v60_v11 = vand.u32 127, %v59_v7  ;;  %v62_v12 = vshrl.u32 %v59_v7, 7  ;;  %s127_s19 = scalar_lea.vmem %s75_s1, 16  ;;  %s131_s20 = scalar_lea.vmem %s75_s1, 32 }
  0x1c   :  { %41 = vadd.xlane.f32.xlu1 %v40_v2  ;;  %v51_v5 = vsel %vm45_vm0, %v50_v3, 0.0  ;;  %p128_p10 = scmp.ne.s32.totalorder %s75_s1, %s127_s19  ;;  %p132_p11 = scmp.lt.s32.totalorder %s75_s1, %s75_s1 }
  0x1d   :  { %v63_v16 = vsub.s32 %v60_v11, %v62_v12  ;;  %p133_p12 = scmp.lt.s32.totalorder %s131_s20, %s127_s19 }
  0x1e   :  { %47 = vadd.xlane.f32.xlu0 %v46_v4 }
  0x1f   :  { %p134_p13 = por %p133_p12, %p132_p11 }
  0x20   :  { %52 = vadd.xlane.f32.xlu1 %v51_v5 }
  0x21   :  { %p135_p0 = pnand %p134_p13, %p128_p10 }
  0xa3   :  { %v38_v6 = vpop.xlane.xlu0 %37 }
  0xa5   :  { %v42_v8 = vpop.xlane.xlu1 %41 }
  0xa7   :  { %v48_v9 = vpop.xlane.xlu0 %47 }
  0xa8   :  { %v49_v10 = vadd.f32 %v48_v9, %v38_v6 }
  0xa9   :  { %v53_v13 = vpop.xlane.xlu1 %52 }
  0xaa   :  { %v55_v14 = vmul.f32 %v49_v10, %v49_v10  ;;  %v54_v15 = vadd.f32 %v53_v13, %v42_v8 }
  0xac   :  { %v56_v17 = vsub.f32 %v55_v14, %v54_v15 }
  0xae   :  { %v57_v18 = vmul.f32 0.5, %v56_v17 }
  0xb0   :  { %v64_v19 = vrot.slane %v57_v18, %v63_v16 }
  0xb2   :  { %67 = vst.msk [vmem:[#allocation7] sm:$0x1] %vm66_vm1, %v64_v19 }
  0xb3   :  { %138 = shalt.err (!%p135_p0)
}
  0xb4   :  { %77 = dma.vmem_to_hbm [thread:$0]  %s75_s1, 16, %s182_s2, [#allocation4]  }
  0xb5   :  { %151 = dma.done.wait [#allocation4], 16  }
  0xb6   :  { %152 = vsyncadd [#allocation4], 4294967280 }
  0xb7   :  { %81 = vsyncpa [#allocation3], 1 }
  0xb8   :  { %82 = vsyncpa [#allocation6], 1 }
  0xb9   :  { %83 = vsyncpa [#allocation4], 1 }

</bundles_post_ra>
